<compile_context>
chip_gen: v7x
topology: tpu7x:2x2x1
jax: 0.10.0
libtpu: 0.0.40
codegen_flags: <defaults>
</compile_context>

<pallas_src>
import numpy as np
import jax
import jax.numpy as jnp
from jax.experimental import pallas as pl
from jax.experimental.pallas import tpu as pltpu

_LANE = 128
_SUBLANE = 8


def _round_up(x, m):
    return (x + m - 1) // m * m


def _make_kernel(num_mods):
    """Kernel over one batch tile: out = sum_i mod_i @ W_i + b (f32 acc).

    Per-modality dots against resident row-blocks of the fused weight; the
    concat never exists.  Kernel is HBM-bound, so the extra MXU pushes for
    small-K dots are free.
    """

    def kernel(*refs):
        mod_refs = refs[:num_mods]                 # [(TILE_B, f_i)] f32
        w_refs = refs[num_mods:2 * num_mods]       # [(f_i, O)]      f32 (resident)
        b_ref = refs[2 * num_mods]                 # (1, O)          f32 (resident)
        out_ref = refs[2 * num_mods + 1]           # (TILE_B, O)     f32

        acc = jnp.dot(mod_refs[0][...], w_refs[0][...],
                      preferred_element_type=jnp.float32)
        for i in range(1, num_mods):
            acc = acc + jnp.dot(mod_refs[i][...], w_refs[i][...],
                                preferred_element_type=jnp.float32)
        out_ref[...] = (acc + b_ref[...]).astype(out_ref.dtype)

    return kernel


def transductive_forward(modalities, shared_space_matrix, w_pop_t, b_pop,
                         tile_b=2048):
    """modalities: list of [B, f_i] arrays. Returns [B, output_dim] (f32).

    shared_space_matrix: [sum(f_i), H]
    w_pop_t:             [H, O]   (nn.Linear weight, pre-transposed)
    b_pop:               [O]
    """
    B = int(modalities[0].shape[0])
    feature_dims = [int(m.shape[1]) for m in modalities]
    num_mods = len(feature_dims)
    O = int(w_pop_t.shape[1])

    # --- weight precompute (once, batch-independent, f32, high precision) ----
    w_fused = jnp.matmul(shared_space_matrix.astype(jnp.float32),
                         w_pop_t.astype(jnp.float32),
                         precision=jax.lax.Precision.HIGHEST)   # [F, O]
    offs = np.cumsum([0] + feature_dims)
    w_parts = [w_fused[int(offs[i]):int(offs[i + 1]), :]        # [f_i, O]
               for i in range(num_mods)]
    b_row = b_pop.astype(jnp.float32).reshape(1, O)

    # --- batch tiling (no input padding; ragged last tile handled by Pallas) -
    TILE_B = min(int(tile_b), _round_up(B, _SUBLANE))
    TILE_B = _round_up(TILE_B, _SUBLANE)
    grid = (pl.cdiv(B, TILE_B),)

    in_specs = (
        [pl.BlockSpec((TILE_B, fd), lambda i: (i, 0)) for fd in feature_dims]
        + [pl.BlockSpec((fd, O), lambda i: (0, 0)) for fd in feature_dims]
        + [pl.BlockSpec((1, O), lambda i: (0, 0))]
    )
    out_spec = pl.BlockSpec((TILE_B, O), lambda i: (i, 0))

    # Honest VMEM footprint: streamed buffers double-buffered, weights/bias
    # resident (constant index_map -> single buffer).  Account for (8,128)
    # tile padding of narrow last dims inside VMEM.
    def _padded_bytes(rows, cols, itemsize=4):
        return _round_up(rows, _SUBLANE) * _round_up(cols, _LANE) * itemsize

    footprint = 0
    for fd in feature_dims:
        footprint += 2 * _padded_bytes(TILE_B, fd)   # modality tiles, 2 bufs
        footprint += _padded_bytes(fd, O)            # fused-weight rows, resident
    footprint += _padded_bytes(1, O)                 # bias, resident
    footprint += 2 * _padded_bytes(TILE_B, O)        # output tiles, 2 bufs
    vmem_limit = int(max(2 * footprint, 4 * 1024 * 1024))

    def _build(semantics):
        return pl.pallas_call(
            _make_kernel(num_mods),
            out_shape=jax.ShapeDtypeStruct((B, O), jnp.float32),
            grid=grid,
            in_specs=in_specs,
            out_specs=out_spec,
            compiler_params=pltpu.CompilerParams(
                dimension_semantics=semantics,
                vmem_limit_bytes=vmem_limit),
        )

    args = tuple(m.astype(jnp.float32) for m in modalities) + tuple(w_parts) + (b_row,)

    # v7x: shard the batch-tile axis across both TensorCores.  Fall back to
    # plain "parallel" if the backend/generation rejects CORE_PARALLEL.
    core_parallel = getattr(pltpu, "CORE_PARALLEL", None)
    if core_parallel is not None:
        try:
            return _build((core_parallel,))(*args)
        except Exception:
            pass
    return _build(("parallel",))(*args)


if __name__ == "__main__":
    # Module hyperparameters (small, consistent with the forward pass).
    num_modalities = 3
    feature_dims = [16, 32, 16]          # sum = 64
    hidden_dim = 32
    output_dim = 8
    batch = 8

    key = jax.random.PRNGKey(0)
    k_mods, k_shared, k_wpop, k_bpop = jax.random.split(key, 4)

    # Deterministic synthetic inputs: one [batch, f_i] array per modality.
    mod_keys = jax.random.split(k_mods, num_modalities)
    modalities = [
        jax.random.normal(mk, (batch, fd), dtype=jnp.float32)
        for mk, fd in zip(mod_keys, feature_dims)
    ]

    # Deterministic synthetic parameters (shapes from __init__).
    shared_space_matrix = jax.random.normal(
        k_shared, (sum(feature_dims), hidden_dim), dtype=jnp.float32)
    # nn.Linear(hidden_dim, output_dim): weight [O, H], bias [O].
    w_pop = jax.random.normal(
        k_wpop, (output_dim, hidden_dim), dtype=jnp.float32) * 0.1
    b_pop = jax.random.normal(k_bpop, (output_dim,), dtype=jnp.float32) * 0.1
    w_pop_t = w_pop.T                                  # [H, O]

    out = transductive_forward(modalities, shared_space_matrix, w_pop_t, b_pop)
    out = jax.block_until_ready(out)

    # Reference check against plain-JAX f32 math (original op order).
    # All buffers are f32 now; remaining deviation comes from the MXU's
    # default f32 matmul precision + fused-weight rounding order.
    x = jnp.concatenate(modalities, axis=1)
    ref = x @ shared_space_matrix @ w_pop_t + b_pop
    assert out.shape == (batch, output_dim)
    max_err = float(jnp.max(jnp.abs(out - ref)))
    assert jnp.allclose(out, ref, atol=2e-2, rtol=2e-2), max_err

    print("KERNEL_OK")
</pallas_src>

<mosaic_0001>
module attributes {stable_mosaic.version = 11 : i64} {
  func.func @kernel(%arg0: i32, %arg1: memref<8x16xf32, #tpu.memory_space<vmem>>, %arg2: memref<8x32xf32, #tpu.memory_space<vmem>>, %arg3: memref<8x16xf32, #tpu.memory_space<vmem>>, %arg4: memref<16x8xf32, #tpu.memory_space<vmem>>, %arg5: memref<32x8xf32, #tpu.memory_space<vmem>>, %arg6: memref<16x8xf32, #tpu.memory_space<vmem>>, %arg7: memref<1x8xf32, #tpu.memory_space<vmem>>, %arg8: memref<8x8xf32, #tpu.memory_space<vmem>>) attributes {dimension_semantics = [#tpu.dimension_semantics<core_parallel>], iteration_bounds = array<i64: 1>, scalar_prefetch = 0 : i64, scratch_operands = 0 : i64, tpu.core_type = #tpu.core_type<tc>, window_params = [{transform_indices = @transform_0, window_bounds = array<i64: 8, 16>}, {transform_indices = @transform_1, window_bounds = array<i64: 8, 32>}, {transform_indices = @transform_2, window_bounds = array<i64: 8, 16>}, {pipeline_mode = #tpu.pipeline_mode<synchronous>, transform_indices = @transform_3, window_bounds = array<i64: 16, 8>}, {pipeline_mode = #tpu.pipeline_mode<synchronous>, transform_indices = @transform_4, window_bounds = array<i64: 32, 8>}, {pipeline_mode = #tpu.pipeline_mode<synchronous>, transform_indices = @transform_5, window_bounds = array<i64: 16, 8>}, {pipeline_mode = #tpu.pipeline_mode<synchronous>, transform_indices = @transform_6, window_bounds = array<i64: 1, 8>}, {transform_indices = @transform_7, window_bounds = array<i64: 8, 8>}]} {
    %c0 = arith.constant 0 : index
    %c0_0 = arith.constant 0 : index
    %0 = vector.load %arg1[%c0, %c0_0] : memref<8x16xf32, #tpu.memory_space<vmem>>, vector<8x16xf32>
    %c0_1 = arith.constant 0 : index
    %c0_2 = arith.constant 0 : index
    %1 = vector.load %arg4[%c0_1, %c0_2] : memref<16x8xf32, #tpu.memory_space<vmem>>, vector<16x8xf32>
    %cst = arith.constant dense<0.000000e+00> : vector<8x8xf32>
    %2 = tpu.matmul %0, %1, %cst {dimension_numbers = #tpu.dot_dimension_numbers<[1], [0], [0], [1], [0, 0, 1, 1], [], []>} : vector<8x16xf32>, vector<16x8xf32>, vector<8x8xf32> -> vector<8x8xf32>
    %c0_3 = arith.constant 0 : index
    %c0_4 = arith.constant 0 : index
    %3 = vector.load %arg2[%c0_3, %c0_4] : memref<8x32xf32, #tpu.memory_space<vmem>>, vector<8x32xf32>
    %c0_5 = arith.constant 0 : index
    %c0_6 = arith.constant 0 : index
    %4 = vector.load %arg5[%c0_5, %c0_6] : memref<32x8xf32, #tpu.memory_space<vmem>>, vector<32x8xf32>
    %cst_7 = arith.constant dense<0.000000e+00> : vector<8x8xf32>
    %5 = tpu.matmul %3, %4, %cst_7 {dimension_numbers = #tpu.dot_dimension_numbers<[1], [0], [0], [1], [0, 0, 1, 1], [], []>} : vector<8x32xf32>, vector<32x8xf32>, vector<8x8xf32> -> vector<8x8xf32>
    %6 = arith.addf %2, %5 : vector<8x8xf32>
    %c0_8 = arith.constant 0 : index
    %c0_9 = arith.constant 0 : index
    %7 = vector.load %arg3[%c0_8, %c0_9] : memref<8x16xf32, #tpu.memory_space<vmem>>, vector<8x16xf32>
    %c0_10 = arith.constant 0 : index
    %c0_11 = arith.constant 0 : index
    %8 = vector.load %arg6[%c0_10, %c0_11] : memref<16x8xf32, #tpu.memory_space<vmem>>, vector<16x8xf32>
    %cst_12 = arith.constant dense<0.000000e+00> : vector<8x8xf32>
    %9 = tpu.matmul %7, %8, %cst_12 {dimension_numbers = #tpu.dot_dimension_numbers<[1], [0], [0], [1], [0, 0, 1, 1], [], []>} : vector<8x16xf32>, vector<16x8xf32>, vector<8x8xf32> -> vector<8x8xf32>
    %10 = arith.addf %6, %9 : vector<8x8xf32>
    %c0_13 = arith.constant 0 : index
    %c0_14 = arith.constant 0 : index
    %11 = vector.load %arg7[%c0_13, %c0_14] : memref<1x8xf32, #tpu.memory_space<vmem>>, vector<1x8xf32>
    %12 = vector.broadcast %11 : vector<1x8xf32> to vector<8x8xf32>
    %13 = arith.addf %10, %12 : vector<8x8xf32>
    %c0_15 = arith.constant 0 : index
    %c0_16 = arith.constant 0 : index
    %14 = vector.load %arg8[%c0_15, %c0_16] : memref<8x8xf32, #tpu.memory_space<vmem>>, vector<8x8xf32>
    tpu.vector_store %arg8[%c0_15, %c0_16], %13 {strides = array<i32>} : memref<8x8xf32, #tpu.memory_space<vmem>>, vector<8x8xf32>,
    return
  }
  func.func @transform_0(%arg0: i32) -> (i32, i32) {
    %c0_i32 = arith.constant 0 : i32
    %c0_i32_0 = arith.constant 0 : i32
    return %arg0, %c0_i32 : i32, i32
  }
  func.func @transform_1(%arg0: i32) -> (i32, i32) {
    %c0_i32 = arith.constant 0 : i32
    %c0_i32_0 = arith.constant 0 : i32
    return %arg0, %c0_i32 : i32, i32
  }
  func.func @transform_2(%arg0: i32) -> (i32, i32) {
    %c0_i32 = arith.constant 0 : i32
    %c0_i32_0 = arith.constant 0 : i32
    return %arg0, %c0_i32 : i32, i32
  }
  func.func @transform_3(%arg0: i32) -> (i32, i32) {
    %c0_i32 = arith.constant 0 : i32
    %c0_i32_0 = arith.constant 0 : i32
    %c0_i32_1 = arith.constant 0 : i32
    return %c0_i32, %c0_i32_0 : i32, i32
  }
  func.func @transform_4(%arg0: i32) -> (i32, i32) {
    %c0_i32 = arith.constant 0 : i32
    %c0_i32_0 = arith.constant 0 : i32
    %c0_i32_1 = arith.constant 0 : i32
    return %c0_i32, %c0_i32_0 : i32, i32
  }
  func.func @transform_5(%arg0: i32) -> (i32, i32) {
    %c0_i32 = arith.constant 0 : i32
    %c0_i32_0 = arith.constant 0 : i32
    %c0_i32_1 = arith.constant 0 : i32
    return %c0_i32, %c0_i32_0 : i32, i32
  }
  func.func @transform_6(%arg0: i32) -> (i32, i32) {
    %c0_i32 = arith.constant 0 : i32
    %c0_i32_0 = arith.constant 0 : i32
    %c0_i32_1 = arith.constant 0 : i32
    return %c0_i32, %c0_i32_0 : i32, i32
  }
  func.func @transform_7(%arg0: i32) -> (i32, i32) {
    %c0_i32 = arith.constant 0 : i32
    %c0_i32_0 = arith.constant 0 : i32
    return %arg0, %c0_i32 : i32, i32
  }
}

module attributes {stable_mosaic.version = 11 : i64} {
  func.func @kernel(%arg0: i32, %arg1: memref<8x16xf32, #tpu.memory_space<vmem>>, %arg2: memref<8x32xf32, #tpu.memory_space<vmem>>, %arg3: memref<8x16xf32, #tpu.memory_space<vmem>>, %arg4: memref<16x8xf32, #tpu.memory_space<vmem>>, %arg5: memref<32x8xf32, #tpu.memory_space<vmem>>, %arg6: memref<16x8xf32, #tpu.memory_space<vmem>>, %arg7: memref<1x8xf32, #tpu.memory_space<vmem>>, %arg8: memref<8x8xf32, #tpu.memory_space<vmem>>) attributes {dimension_semantics = [#tpu.dimension_semantics<parallel>], iteration_bounds = array<i64: 1>, scalar_prefetch = 0 : i64, scratch_operands = 0 : i64, tpu.core_type = #tpu.core_type<tc>, window_params = [{transform_indices = @transform_0, window_bounds = array<i64: 8, 16>}, {transform_indices = @transform_1, window_bounds = array<i64: 8, 32>}, {transform_indices = @transform_2, window_bounds = array<i64: 8, 16>}, {pipeline_mode = #tpu.pipeline_mode<synchronous>, transform_indices = @transform_3, window_bounds = array<i64: 16, 8>}, {pipeline_mode = #tpu.pipeline_mode<synchronous>, transform_indices = @transform_4, window_bounds = array<i64: 32, 8>}, {pipeline_mode = #tpu.pipeline_mode<synchronous>, transform_indices = @transform_5, window_bounds = array<i64: 16, 8>}, {pipeline_mode = #tpu.pipeline_mode<synchronous>, transform_indices = @transform_6, window_bounds = array<i64: 1, 8>}, {transform_indices = @transform_7, window_bounds = array<i64: 8, 8>}]} {
    %c0 = arith.constant 0 : index
    %c0_0 = arith.constant 0 : index
    %0 = vector.load %arg1[%c0, %c0_0] : memref<8x16xf32, #tpu.memory_space<vmem>>, vector<8x16xf32>
    %c0_1 = arith.constant 0 : index
    %c0_2 = arith.constant 0 : index
    %1 = vector.load %arg4[%c0_1, %c0_2] : memref<16x8xf32, #tpu.memory_space<vmem>>, vector<16x8xf32>
    %cst = arith.constant dense<0.000000e+00> : vector<8x8xf32>
    %2 = tpu.matmul %0, %1, %cst {dimension_numbers = #tpu.dot_dimension_numbers<[1], [0], [0], [1], [0, 0, 1, 1], [], []>} : vector<8x16xf32>, vector<16x8xf32>, vector<8x8xf32> -> vector<8x8xf32>
    %c0_3 = arith.constant 0 : index
    %c0_4 = arith.constant 0 : index
    %3 = vector.load %arg2[%c0_3, %c0_4] : memref<8x32xf32, #tpu.memory_space<vmem>>, vector<8x32xf32>
    %c0_5 = arith.constant 0 : index
    %c0_6 = arith.constant 0 : index
    %4 = vector.load %arg5[%c0_5, %c0_6] : memref<32x8xf32, #tpu.memory_space<vmem>>, vector<32x8xf32>
    %cst_7 = arith.constant dense<0.000000e+00> : vector<8x8xf32>
    %5 = tpu.matmul %3, %4, %cst_7 {dimension_numbers = #tpu.dot_dimension_numbers<[1], [0], [0], [1], [0, 0, 1, 1], [], []>} : vector<8x32xf32>, vector<32x8xf32>, vector<8x8xf32> -> vector<8x8xf32>
    %6 = arith.addf %2, %5 : vector<8x8xf32>
    %c0_8 = arith.constant 0 : index
    %c0_9 = arith.constant 0 : index
    %7 = vector.load %arg3[%c0_8, %c0_9] : memref<8x16xf32, #tpu.memory_space<vmem>>, vector<8x16xf32>
    %c0_10 = arith.constant 0 : index
    %c0_11 = arith.constant 0 : index
    %8 = vector.load %arg6[%c0_10, %c0_11] : memref<16x8xf32, #tpu.memory_space<vmem>>, vector<16x8xf32>
    %cst_12 = arith.constant dense<0.000000e+00> : vector<8x8xf32>
    %9 = tpu.matmul %7, %8, %cst_12 {dimension_numbers = #tpu.dot_dimension_numbers<[1], [0], [0], [1], [0, 0, 1, 1], [], []>} : vector<8x16xf32>, vector<16x8xf32>, vector<8x8xf32> -> vector<8x8xf32>
    %10 = arith.addf %6, %9 : vector<8x8xf32>
    %c0_13 = arith.constant 0 : index
    %c0_14 = arith.constant 0 : index
    %11 = vector.load %arg7[%c0_13, %c0_14] : memref<1x8xf32, #tpu.memory_space<vmem>>, vector<1x8xf32>
    %12 = vector.broadcast %11 : vector<1x8xf32> to vector<8x8xf32>
    %13 = arith.addf %10, %12 : vector<8x8xf32>
    %c0_15 = arith.constant 0 : index
    %c0_16 = arith.constant 0 : index
    %14 = vector.load %arg8[%c0_15, %c0_16] : memref<8x8xf32, #tpu.memory_space<vmem>>, vector<8x8xf32>
    tpu.vector_store %arg8[%c0_15, %c0_16], %13 {strides = array<i32>} : memref<8x8xf32, #tpu.memory_space<vmem>>, vector<8x8xf32>,
    return
  }
  func.func @transform_0(%arg0: i32) -> (i32, i32) {
    %c0_i32 = arith.constant 0 : i32
    %c0_i32_0 = arith.constant 0 : i32
    return %arg0, %c0_i32 : i32, i32
  }
  func.func @transform_1(%arg0: i32) -> (i32, i32) {
    %c0_i32 = arith.constant 0 : i32
    %c0_i32_0 = arith.constant 0 : i32
    return %arg0, %c0_i32 : i32, i32
  }
  func.func @transform_2(%arg0: i32) -> (i32, i32) {
    %c0_i32 = arith.constant 0 : i32
    %c0_i32_0 = arith.constant 0 : i32
    return %arg0, %c0_i32 : i32, i32
  }
  func.func @transform_3(%arg0: i32) -> (i32, i32) {
    %c0_i32 = arith.constant 0 : i32
    %c0_i32_0 = arith.constant 0 : i32
    %c0_i32_1 = arith.constant 0 : i32
    return %c0_i32, %c0_i32_0 : i32, i32
  }
  func.func @transform_4(%arg0: i32) -> (i32, i32) {
    %c0_i32 = arith.constant 0 : i32
    %c0_i32_0 = arith.constant 0 : i32
    %c0_i32_1 = arith.constant 0 : i32
    return %c0_i32, %c0_i32_0 : i32, i32
  }
  func.func @transform_5(%arg0: i32) -> (i32, i32) {
    %c0_i32 = arith.constant 0 : i32
    %c0_i32_0 = arith.constant 0 : i32
    %c0_i32_1 = arith.constant 0 : i32
    return %c0_i32, %c0_i32_0 : i32, i32
  }
  func.func @transform_6(%arg0: i32) -> (i32, i32) {
    %c0_i32 = arith.constant 0 : i32
    %c0_i32_0 = arith.constant 0 : i32
    %c0_i32_1 = arith.constant 0 : i32
    return %c0_i32, %c0_i32_0 : i32, i32
  }
  func.func @transform_7(%arg0: i32) -> (i32, i32) {
    %c0_i32 = arith.constant 0 : i32
    %c0_i32_0 = arith.constant 0 : i32
    return %arg0, %c0_i32 : i32, i32
  }
}

</mosaic_0001>

<bundles_post_ra>
// kernel: tpu_custom_call.1
= control target key start
LH: loop header
LB: loop body
LE: loop exit
PB: predicated region body
PF: predicated region fallthrough
CT: control target
= control target key end

     0   :  { %s472_s24 = sld [smem:[#allocation0]]   ;;  %s523_s0 = inlined_call_operand.vmem [shape: f32[8,16], index: 0, kind: input, shape index: {}]   ;;  %s524_s1 = inlined_call_operand.vmem [shape: f32[8,32], index: 1, kind: input, shape index: {}]   ;;  %s525_s2 = inlined_call_operand.vmem [shape: f32[8,16], index: 2, kind: input, shape index: {}]   ;;  %s526_s3 = inlined_call_operand.vmem [shape: f32[16,8], index: 3, kind: input, shape index: {}]   ;;  %s527_s4 = inlined_call_operand.vmem [shape: f32[32,8], index: 4, kind: input, shape index: {}]   ;;  %s528_s5 = inlined_call_operand.vmem [shape: f32[16,8], index: 5, kind: input, shape index: {}]   ;;  %s529_s6 = inlined_call_operand.vmem [shape: f32[1,8], index: 6, kind: input, shape index: {}]   ;;  %s530_s7 = inlined_call_operand.hbm [shape: f32[8,8], index: 7, kind: output, shape index: {}]  }
   0x1   :  { %v67_v0 = vld [vmem:[%s527_s4] sm:$0xff]  ;;  %v68_v1 = vld [vmem:[%s527_s4 + $0x8] sm:$0xff]  ;;  %v428_v3 = vmov 0.0|0.0   ;;  %v69_v6 = vld [vmem:[%s527_s4 + $0x10] sm:$0xff]  ;;  %vm429_vm0 = vmmov 0   ;;  %v430_v9 = vmov 0.0  }
   0x2   :  { %v64_v2 = vld [vmem:[%s526_s3] sm:$0xff]  ;;  %386 = vmatprep.subr.bf16.mxu0 %v428_v3  ;;  %v387_v4 = vpack.c.bf16 %v68_v1, %v67_v0  ;;  %392 = vmatprep.subr.bf16.mxu1 %v428_v3  ;;  %v65_v5 = vld [vmem:[%s526_s3 + $0x8] sm:$0xff]  ;;  %v70_v7 = vld [vmem:[%s527_s4 + $0x18] sm:$0xff] }
   0x3   :  { %v393_v8 = vpack.c.bf16 %v65_v5, %v64_v2  ;;  %376 = vmatprep.mubr.msk.f32.mxu1 %vm429_vm0, %v430_v9  ;;  %v220_v10 = vld [vmem:[%s528_s5] sm:$0xff]  ;;  %v221_v11 = vld [vmem:[%s528_s5 + $0x8] sm:$0xff]  ;;  %369 = vmatprep.mubr.msk.f32.mxu0 %vm429_vm0, %v430_v9 }
   0x4   :  { %12 = vsyncpa [#allocation3], 0  ;;  %388 = vmatpush3.bf16.msra.mxu0 %v387_v4  ;;  %v390_v12 = vpack.c.bf16 %v70_v7, %v69_v6  ;;  %vm145_vm1 = vcmask 130048   ;;  %v396_v13 = vpack.c.bf16 %v221_v11, %v220_v10  ;;  %v63_v14 = vld [vmem:[%s523_s0] sm:$0xff]  ;;  %vm71_vm2 = vcmask 261120   ;;  %s431_s22 = smov [#allocation2]  }
   0x5   :  { %394 = vmatpush3.bf16.msra.mxu1 %v393_v8  ;;  %389 = vmatprep.subr.bf16.mxu0 %v428_v3  ;;  %v66_v15 = vld [vmem:[%s524_s1] sm:$0xff]  ;;  %s314_s23 = sshll.u32 %s431_s22, 4  ;;  %vm304_vm3 = vcmask 64512   ;;  %s315_s23 = int_to_ptr.vmem [resolvable:$true] %s314_s23 }
   0x6   :  { %395 = vmatprep.subr.bf16.mxu1 %v428_v3  ;;  %v219_v16 = vld [vmem:[%s525_s2] sm:$0xff]  ;;  %s349_s1 = sshll.u32 %s472_s24, 7  ;;  %s402_s27 = scalar_lea.vmem %s315_s23, 128 }
   0x7   :  { %v348_v23 = vld [vmem:[%s529_s6] ss:$0 sm:$0xff]  ;;  %s312_s26 = scalar_lea.hbm %s530_s7, %s349_s1  ;;  %p403_p0 = scmp.ne.s32.totalorder %s315_s23, %s402_s27 }
   0x8   :  { %391 = vmatpush3.bf16.msra.mxu0 %v390_v12  ;;  %377 = vmatmul.mubr.msk.f32.vlgmr.msra.gmra.mrb[0].mxu1 %vm145_vm1, %v63_v14  ;;  %p407_p1 = scmp.lt.s32.totalorder %s315_s23, %s315_s23  ;;  %p408_p2 = scmp.lt.s32.totalorder %s402_s27, %s402_s27 }
   0x9   :  { %397 = vmatpush3.bf16.msra.mxu1 %v396_v13  ;;  %383 = vmatprep.mubr.msk.f32.mxu1 %vm429_vm0, %v430_v9 }
   0xa   :  { %p409_p3 = por %p408_p2, %p407_p1 }
   0xb   :  { %370 = vmatmul.mubr.msk.f32.vlgmr.msra.gmra.mrb[0].mxu0 %vm71_vm2, %v66_v15 }
   0xc   :  { %384 = vmatmul.mubr.msk.f32.vlgmr.msra.gmra.mrb[2].mxu1 %vm145_vm1, %v219_v16  ;;  %p410_p4 = pnand %p409_p3, %p403_p0 }
  0xdb   :  { %v215_v17 = vpop.f32.mrb[0].mxu1 }
  0xdc   :  { %v378_v18 = vpop.f32.mrb[1].mxu1 }
  0xde   :  { %v141_v19 = vpop.f32.mrb[0].mxu0 }
  0xdf   :  { %v216_v20 = vadd.f32 %v215_v17, %v141_v19  ;;  %v371_v21 = vpop.f32.mrb[1].mxu0  ;;  %v291_v22 = vpop.f32.mrb[2].mxu1 }
  0xe0   :  { %v385_v24 = vpop.f32.mrb[3].mxu1 }
  0xe1   :  { %v295_v25 = vadd.f32 %v291_v22, %v216_v20 }
  0xe3   :  { %v303_v26 = vadd.f32 %v348_v23, %v295_v25 }
  0xe5   :  { %305 = vst.msk [vmem:[#allocation2] sm:$0xff] %vm304_vm3, %v303_v26 }
  0xe6   :  { %413 = shalt.err (!%p410_p4)
}
  0xe7   :  { %s414_s6 = scalar_lea.hbm %s312_s26, 128  ;;  %s416_s29 = scalar_lea.hbm %s530_s7, 128 }
  0xe8   :  { %p415_p5 = scmp.ne.s32.totalorder %s312_s26, %s414_s6  ;;  %p417_p6 = scmp.lt.u32.totalorder %s312_s26, %s530_s7 }
  0xe9   :  { %p418_p7 = scmp.lt.u32.totalorder %s416_s29, %s414_s6  ;;  %p420_p9 = scmp.lt.u32.totalorder %s414_s6, %s312_s26 }
  0xeb   :  { %p419_p8 = por %p418_p7, %p417_p6 }
  0xed   :  { %p421_p10 = por %p420_p9, %p419_p8 }
  0xef   :  { %p422_p11 = pnand %p421_p10, %p415_p5 }
  0xf1   :  { %425 = shalt.err (!%p422_p11)
}
  0xf2   :  { %317 = dma.vmem_to_hbm [thread:$0]  %s315_s23, 128, %s312_s26, [#allocation3]  }
  0xf3   :  { %426 = dma.done.wait [#allocation3], 128  }
  0xf4   :  { %427 = vsyncadd [#allocation3], 4294967168 }
  0xf5   :  { %321 = vsyncpa [#allocation3], 1 }

// kernel: tpu_custom_call.1
= control target key start
LH: loop header
LB: loop body
LE: loop exit
PB: predicated region body
PF: predicated region fallthrough
CT: control target
= control target key end

     0   :  { %v364_v3 = vmov 0.0|0.0   ;;  %vm365_vm0 = vmmov 0   ;;  %v366_v9 = vmov 0.0   ;;  %s459_s0 = inlined_call_operand.vmem [shape: f32[8,16], index: 0, kind: input, shape index: {}]   ;;  %s460_s1 = inlined_call_operand.vmem [shape: f32[8,32], index: 1, kind: input, shape index: {}]   ;;  %s461_s2 = inlined_call_operand.vmem [shape: f32[8,16], index: 2, kind: input, shape index: {}]   ;;  %s462_s3 = inlined_call_operand.vmem [shape: f32[16,8], index: 3, kind: input, shape index: {}]   ;;  %s463_s4 = inlined_call_operand.vmem [shape: f32[32,8], index: 4, kind: input, shape index: {}]   ;;  %s464_s5 = inlined_call_operand.vmem [shape: f32[16,8], index: 5, kind: input, shape index: {}]   ;;  %s465_s6 = inlined_call_operand.vmem [shape: f32[1,8], index: 6, kind: input, shape index: {}]   ;;  %s466_s7 = inlined_call_operand.hbm [shape: f32[8,8], index: 7, kind: output, shape index: {}]  }
   0x1   :  { %v31_v0 = vld [vmem:[%s463_s4] sm:$0xff]  ;;  %v32_v1 = vld [vmem:[%s463_s4 + $0x8] sm:$0xff]  ;;  %324 = vmatprep.subr.bf16.mxu0 %v364_v3  ;;  %330 = vmatprep.subr.bf16.mxu1 %v364_v3  ;;  %v33_v6 = vld [vmem:[%s463_s4 + $0x10] sm:$0xff] }
   0x2   :  { %v28_v2 = vld [vmem:[%s462_s3] sm:$0xff]  ;;  %v325_v4 = vpack.c.bf16 %v32_v1, %v31_v0  ;;  %v29_v5 = vld [vmem:[%s462_s3 + $0x8] sm:$0xff]  ;;  %v34_v7 = vld [vmem:[%s463_s4 + $0x18] sm:$0xff]  ;;  %314 = vmatprep.mubr.msk.f32.mxu1 %vm365_vm0, %v366_v9  ;;  %307 = vmatprep.mubr.msk.f32.mxu0 %vm365_vm0, %v366_v9 }
   0x3   :  { %v331_v8 = vpack.c.bf16 %v29_v5, %v28_v2  ;;  %v184_v10 = vld [vmem:[%s464_s5] sm:$0xff]  ;;  %v185_v11 = vld [vmem:[%s464_s5 + $0x8] sm:$0xff]  ;;  %v328_v12 = vpack.c.bf16 %v34_v7, %v33_v6 }
   0x4   :  { %326 = vmatpush3.bf16.msra.mxu0 %v325_v4 }
   0x5   :  { %12 = vsyncpa [#allocation3], 0  ;;  %332 = vmatpush3.bf16.msra.mxu1 %v331_v8  ;;  %327 = vmatprep.subr.bf16.mxu0 %v364_v3  ;;  %v27_v13 = vld [vmem:[%s459_s0] sm:$0xff]  ;;  %vm109_vm1 = vcmask 130048   ;;  %v334_v14 = vpack.c.bf16 %v185_v11, %v184_v10  ;;  %vm35_vm2 = vcmask 261120   ;;  %vm268_vm3 = vcmask 64512  }
   0x6   :  { %333 = vmatprep.subr.bf16.mxu1 %v364_v3  ;;  %v30_v15 = vld [vmem:[%s460_s1] sm:$0xff]  ;;  %s367_s1 = smov [#allocation2]  }
   0x7   :  { %v183_v16 = vld [vmem:[%s461_s2] sm:$0xff]  ;;  %s276_s21 = sshll.u32 %s367_s1, 4  ;;  %s277_s21 = int_to_ptr.vmem [resolvable:$true] %s276_s21 }
   0x8   :  { %329 = vmatpush3.bf16.msra.mxu0 %v328_v12  ;;  %315 = vmatmul.mubr.msk.f32.vlgmr.msra.gmra.mrb[0].mxu1 %vm109_vm1, %v27_v13  ;;  %v287_v23 = vld [vmem:[%s465_s6] ss:$0 sm:$0xff]  ;;  %s340_s2 = scalar_lea.vmem %s277_s21, 128  ;;  %p345_p1 = scmp.lt.s32.totalorder %s277_s21, %s277_s21 }
   0x9   :  { %335 = vmatpush3.bf16.msra.mxu1 %v334_v14  ;;  %321 = vmatprep.mubr.msk.f32.mxu1 %vm365_vm0, %v366_v9  ;;  %p341_p0 = scmp.ne.s32.totalorder %s277_s21, %s340_s2  ;;  %p346_p2 = scmp.lt.s32.totalorder %s340_s2, %s340_s2 }
   0xb   :  { %308 = vmatmul.mubr.msk.f32.vlgmr.msra.gmra.mrb[0].mxu0 %vm35_vm2, %v30_v15  ;;  %p347_p3 = por %p346_p2, %p345_p1 }
   0xc   :  { %322 = vmatmul.mubr.msk.f32.vlgmr.msra.gmra.mrb[2].mxu1 %vm109_vm1, %v183_v16 }
   0xd   :  { %p348_p4 = pnand %p347_p3, %p341_p0 }
  0xdb   :  { %v179_v17 = vpop.f32.mrb[0].mxu1 }
  0xdc   :  { %v316_v18 = vpop.f32.mrb[1].mxu1 }
  0xde   :  { %v105_v19 = vpop.f32.mrb[0].mxu0 }
  0xdf   :  { %v180_v20 = vadd.f32 %v179_v17, %v105_v19  ;;  %v309_v21 = vpop.f32.mrb[1].mxu0  ;;  %v255_v22 = vpop.f32.mrb[2].mxu1 }
  0xe0   :  { %v323_v24 = vpop.f32.mrb[3].mxu1 }
  0xe1   :  { %v259_v25 = vadd.f32 %v255_v22, %v180_v20 }
  0xe3   :  { %v267_v26 = vadd.f32 %v287_v23, %v259_v25 }
  0xe5   :  { %269 = vst.msk [vmem:[#allocation2] sm:$0xff] %vm268_vm3, %v267_v26 }
  0xe6   :  { %351 = shalt.err (!%p348_p4)
}
  0xe7   :  { %s352_s24 = scalar_lea.hbm %s466_s7, 128 }
  0xe8   :  { %p353_p5 = scmp.ne.s32.totalorder %s466_s7, %s352_s24  ;;  %p356_p6 = scmp.lt.u32.totalorder %s352_s24, %s466_s7 }
  0xea   :  { %p358_p7 = pnand %p356_p6, %p353_p5 }
  0xec   :  { %361 = shalt.err (!%p358_p7)
}
  0xed   :  { %279 = dma.vmem_to_hbm [thread:$0]  %s277_s21, 128, %s466_s7, [#allocation3]  }
  0xee   :  { %362 = dma.done.wait [#allocation3], 128  }
  0xef   :  { %363 = vsyncadd [#allocation3], 4294967168 }
  0xf0   :  { %283 = vsyncpa [#allocation3], 1 }

</bundles_post_ra>
